<compile_context>
chip_gen: v6e
topology: v6e:2x2x1
jax: 0.10.0
libtpu: 0.0.40
codegen_flags: <defaults>
</compile_context>

<pallas_src>
import functools

import jax
import jax.numpy as jnp
from jax import lax
from jax.experimental import pallas as pl
from jax.experimental.pallas import tpu as pltpu


def actor_kernel(xT_ref, gT_ref, w1t_ref, w2t_ref, w3t_ref, b_ref,
                 actT_ref, logitsT_ref, *, hidden, out_dim):
    """One batch tile (batch on lanes): fused MLP + Gumbel-max one-hot sample."""
    xT = xT_ref[...]                                   # (in_dim, tile) f32

    # Fused bias slab: [b1 ; b2 ; b3] stacked along sublanes, broadcast over lanes.
    b1 = b_ref[0:hidden, :]                            # (hidden, 1) f32
    b2 = b_ref[hidden:2 * hidden, :]                   # (hidden, 1) f32
    b3 = b_ref[2 * hidden:2 * hidden + out_dim, :]     # (out_dim, 1) f32

    # --- feedforward_model (transposed): h^T = relu(W^T h_prev^T + b) ---
    h = jnp.dot(w1t_ref[...], xT.astype(jnp.bfloat16),
                preferred_element_type=jnp.float32) + b1
    h = jnp.maximum(h, 0.0)
    h = jnp.dot(w2t_ref[...], h.astype(jnp.bfloat16),
                preferred_element_type=jnp.float32) + b2
    h = jnp.maximum(h, 0.0)
    logits = jnp.dot(w3t_ref[...], h.astype(jnp.bfloat16),
                     preferred_element_type=jnp.float32) + b3   # (out_dim, tile)
    logitsT_ref[...] = logits

    # --- OneHotCategorical(logits).sample() via Gumbel-max (over sublanes) ---
    z = logits + gT_ref[...]                           # f32, per-column Gumbel noise
    ncat = z.shape[0]
    row = lax.broadcasted_iota(jnp.int32, z.shape, dimension=0)
    m = jnp.max(z, axis=0, keepdims=True)
    # first-index tie-break keeps a strict one-hot guarantee (matches argmax).
    idx = jnp.min(jnp.where(z >= m, row, ncat), axis=0, keepdims=True)
    actT_ref[...] = (row == idx).astype(jnp.float32)


def _round_up(n, m):
    return ((n + m - 1) // m) * m


def _tensorcores_per_device():
    """Best-effort TC count per device: 2 on megacore (v4/v5p) and v7x, else 1."""
    try:
        kind = jax.devices()[0].device_kind.lower()
    except Exception:
        return 1
    return 2 if any(tag in kind for tag in ("v4", "v5p", "v7")) else 1


def actor_forward(x, params, key, *, max_tile=512):
    """Lane-dense (batch-on-lanes) pallas_call; one grid step per TensorCore."""
    w1, b1, w2, b2, w3, b3 = params
    B, in_dim = x.shape
    hidden = w1.shape[1]
    out_dim = w3.shape[1]

    # Independent Gumbel noise per batch row, generated once (tiling-agnostic).
    gumbel = jax.random.gumbel(key, (B, out_dim), dtype=jnp.float32)

    # --- grid / tile selection ------------------------------------------
    tc = _tensorcores_per_device()
    num_tiles = 1 if B <= 128 else tc                  # 1 step on 1-TC chips
    num_tiles = max(num_tiles, -(-B // max_tile))      # cap tile for vreg pressure
    if num_tiles > 1:
        num_tiles = _round_up(num_tiles, tc)           # balanced TC load
    tile = _round_up(-(-B // num_tiles), 128)          # lane-dense batch tiles
    Bp = tile * num_tiles

    if Bp != B:
        pad = Bp - B
        x = jnp.pad(x, ((0, pad), (0, 0)))
        gumbel = jnp.pad(gumbel, ((0, pad), (0, 0)))

    # Transposed layout: batch on the lane axis.
    xT = x.T                                           # (in_dim, Bp) f32
    gT = gumbel.T                                      # (out_dim, Bp) f32

    bf = jnp.bfloat16
    w1t = w1.T.astype(bf)                              # (hidden, in_dim)
    w2t = w2.T.astype(bf)                              # (hidden, hidden)
    w3t = w3.T.astype(bf)                              # (out_dim, hidden)
    b_slab = jnp.concatenate(
        [b1.reshape(-1), b2.reshape(-1), b3.reshape(-1)])[:, None]  # (2H+O, 1) f32

    batched = lambda i: (0, i)      # tiles that move with the batch grid
    resident = lambda i: (0, 0)     # weights/biases: DMA once, stay in VMEM

    flops = 2 * Bp * (in_dim * hidden + hidden * hidden + hidden * out_dim)
    bytes_accessed = int(
        xT.size * 4 + gT.size * 4
        + (w1t.size + w2t.size + w3t.size) * 2 + b_slab.size * 4
        + 2 * out_dim * Bp * 4)
    cost = pl.CostEstimate(flops=flops, transcendentals=0,
                           bytes_accessed=bytes_accessed)

    kernel = functools.partial(actor_kernel, hidden=hidden, out_dim=out_dim)

    actT, logitsT = pl.pallas_call(
        kernel,
        out_shape=(
            jax.ShapeDtypeStruct((out_dim, Bp), jnp.float32),   # action^T (one-hot)
            jax.ShapeDtypeStruct((out_dim, Bp), jnp.float32),   # logits^T
        ),
        grid=(num_tiles,),
        in_specs=[
            pl.BlockSpec((in_dim, tile), batched),              # x^T
            pl.BlockSpec((out_dim, tile), batched),             # gumbel^T
            pl.BlockSpec((hidden, in_dim), resident),           # w1^T (bf16)
            pl.BlockSpec((hidden, hidden), resident),           # w2^T (bf16)
            pl.BlockSpec((out_dim, hidden), resident),          # w3^T (bf16)
            pl.BlockSpec((2 * hidden + out_dim, 1), resident),  # fused bias slab
        ],
        out_specs=(
            pl.BlockSpec((out_dim, tile), batched),
            pl.BlockSpec((out_dim, tile), batched),
        ),
        compiler_params=pltpu.CompilerParams(
            dimension_semantics=("parallel",)),
        cost_estimate=cost,
    )(xT, gT, w1t, w2t, w3t, b_slab)

    # Undo the transpose and drop batch padding.
    return actT.T[:B], logitsT.T[:B]


def init_params(key, in_dim, hidden, out_dim):
    """Deterministic synthetic parameters (shapes match nn.Linear layers)."""
    ks = jax.random.split(key, 6)

    def lin(kw, kb, fan_in, fan_out):
        bound = 1.0 / jnp.sqrt(fan_in)
        w = jax.random.uniform(kw, (fan_in, fan_out), jnp.float32, -bound, bound)
        b = jax.random.uniform(kb, (1, fan_out), jnp.float32, -bound, bound)
        return w, b

    w1, b1 = lin(ks[0], ks[1], in_dim, hidden)
    w2, b2 = lin(ks[2], ks[3], hidden, hidden)
    w3, b3 = lin(ks[4], ks[5], hidden, out_dim)
    return (w1, b1, w2, b2, w3, b3)


if __name__ == "__main__":
    # Dreamer-Actor sized features; batch is lane-dense (multiple of 128).
    B, IN_DIM, HIDDEN, OUT_DIM = 256, 32, 64, 16

    key = jax.random.PRNGKey(0)
    kx, kp, kg = jax.random.split(key, 3)
    x = jax.random.normal(kx, (B, IN_DIM), dtype=jnp.float32)
    params = init_params(kp, IN_DIM, HIDDEN, OUT_DIM)

    action, logits = actor_forward(x, params, kg)
    action, logits = jax.block_until_ready((action, logits))

    # Reference logits with the same bf16-matmul / f32-accumulate recipe.
    w1, b1, w2, b2, w3, b3 = params
    bf = jnp.bfloat16
    h = jnp.maximum(jnp.dot(x.astype(bf), w1.astype(bf),
                            preferred_element_type=jnp.float32) + b1, 0.0)
    h = jnp.maximum(jnp.dot(h.astype(bf), w2.astype(bf),
                            preferred_element_type=jnp.float32) + b2, 0.0)
    ref_logits = jnp.dot(h.astype(bf), w3.astype(bf),
                         preferred_element_type=jnp.float32) + b3
    assert logits.shape == (B, OUT_DIM)
    assert jnp.allclose(logits, ref_logits, atol=2e-2, rtol=2e-2), "logits mismatch"

    # Action sanity: valid one-hot, and argmax agrees with logits + same noise.
    assert action.shape == (B, OUT_DIM)
    assert jnp.all(jnp.sum(action, axis=-1) == 1.0), "action is not one-hot"
    assert jnp.all((action == 0.0) | (action == 1.0)), "action not binary"
    gumbel = jax.random.gumbel(kg, (B, OUT_DIM), dtype=jnp.float32)
    assert jnp.all(jnp.argmax(action, axis=-1)
                   == jnp.argmax(logits + gumbel, axis=-1)), "sample mismatch"

    print("KERNEL_OK")
</pallas_src>

<mosaic_0001>
module attributes {stable_mosaic.version = 11 : i64} {
  func.func @actor_kernel(%arg0: i32, %arg1: memref<32x256xf32, #tpu.memory_space<vmem>>, %arg2: memref<16x256xf32, #tpu.memory_space<vmem>>, %arg3: memref<64x32xbf16, #tpu.memory_space<vmem>>, %arg4: memref<64x64xbf16, #tpu.memory_space<vmem>>, %arg5: memref<16x64xbf16, #tpu.memory_space<vmem>>, %arg6: memref<144x1xf32, #tpu.memory_space<vmem>>, %arg7: memref<16x256xf32, #tpu.memory_space<vmem>>, %arg8: memref<16x256xf32, #tpu.memory_space<vmem>>) attributes {dimension_semantics = [#tpu.dimension_semantics<parallel>], iteration_bounds = array<i64: 1>, scalar_prefetch = 0 : i64, scratch_operands = 0 : i64, tpu.core_type = #tpu.core_type<tc>, window_params = [{transform_indices = @transform_0, window_bounds = array<i64: 32, 256>}, {transform_indices = @transform_1, window_bounds = array<i64: 16, 256>}, {pipeline_mode = #tpu.pipeline_mode<synchronous>, transform_indices = @transform_2, window_bounds = array<i64: 64, 32>}, {pipeline_mode = #tpu.pipeline_mode<synchronous>, transform_indices = @transform_3, window_bounds = array<i64: 64, 64>}, {pipeline_mode = #tpu.pipeline_mode<synchronous>, transform_indices = @transform_4, window_bounds = array<i64: 16, 64>}, {pipeline_mode = #tpu.pipeline_mode<synchronous>, transform_indices = @transform_5, window_bounds = array<i64: 144, 1>}, {transform_indices = @transform_6, window_bounds = array<i64: 16, 256>}, {transform_indices = @transform_7, window_bounds = array<i64: 16, 256>}]} {
    %c0 = arith.constant 0 : index
    %c0_0 = arith.constant 0 : index
    %0 = vector.load %arg1[%c0, %c0_0] : memref<32x256xf32, #tpu.memory_space<vmem>>, vector<32x256xf32>
    %c0_1 = arith.constant 0 : index
    %c0_2 = arith.constant 0 : index
    %1 = vector.load %arg6[%c0_1, %c0_2] : memref<144x1xf32, #tpu.memory_space<vmem>>, vector<64x1xf32>
    %c64 = arith.constant 64 : index
    %c0_3 = arith.constant 0 : index
    %2 = vector.load %arg6[%c64, %c0_3] : memref<144x1xf32, #tpu.memory_space<vmem>>, vector<64x1xf32>
    %c128 = arith.constant 128 : index
    %c0_4 = arith.constant 0 : index
    %3 = vector.load %arg6[%c128, %c0_4] : memref<144x1xf32, #tpu.memory_space<vmem>>, vector<16x1xf32>
    %c0_5 = arith.constant 0 : index
    %c0_6 = arith.constant 0 : index
    %4 = vector.load %arg3[%c0_5, %c0_6] : memref<64x32xbf16, #tpu.memory_space<vmem>>, vector<64x32xbf16>
    %5 = arith.truncf %0 : vector<32x256xf32> to vector<32x256xbf16>
    %cst = arith.constant dense<0.000000e+00> : vector<64x256xf32>
    %6 = tpu.matmul %4, %5, %cst {dimension_numbers = #tpu.dot_dimension_numbers<[1], [0], [0], [1], [0, 0, 1, 1], [], []>} : vector<64x32xbf16>, vector<32x256xbf16>, vector<64x256xf32> -> vector<64x256xf32>
    %7 = vector.broadcast %1 : vector<64x1xf32> to vector<64x256xf32>
    %8 = arith.addf %6, %7 : vector<64x256xf32>
    %cst_7 = arith.constant 0.000000e+00 : f32
    %9 = vector.broadcast %cst_7 : f32 to vector<64x256xf32>
    %10 = arith.maximumf %8, %9 : vector<64x256xf32>
    %c0_8 = arith.constant 0 : index
    %c0_9 = arith.constant 0 : index
    %11 = vector.load %arg4[%c0_8, %c0_9] : memref<64x64xbf16, #tpu.memory_space<vmem>>, vector<64x64xbf16>
    %12 = arith.truncf %10 : vector<64x256xf32> to vector<64x256xbf16>
    %cst_10 = arith.constant dense<0.000000e+00> : vector<64x256xf32>
    %13 = tpu.matmul %11, %12, %cst_10 {dimension_numbers = #tpu.dot_dimension_numbers<[1], [0], [0], [1], [0, 0, 1, 1], [], []>} : vector<64x64xbf16>, vector<64x256xbf16>, vector<64x256xf32> -> vector<64x256xf32>
    %14 = vector.broadcast %2 : vector<64x1xf32> to vector<64x256xf32>
    %15 = arith.addf %13, %14 : vector<64x256xf32>
    %cst_11 = arith.constant 0.000000e+00 : f32
    %16 = vector.broadcast %cst_11 : f32 to vector<64x256xf32>
    %17 = arith.maximumf %15, %16 : vector<64x256xf32>
    %c0_12 = arith.constant 0 : index
    %c0_13 = arith.constant 0 : index
    %18 = vector.load %arg5[%c0_12, %c0_13] : memref<16x64xbf16, #tpu.memory_space<vmem>>, vector<16x64xbf16>
    %19 = arith.truncf %17 : vector<64x256xf32> to vector<64x256xbf16>
    %cst_14 = arith.constant dense<0.000000e+00> : vector<16x256xf32>
    %20 = tpu.matmul %18, %19, %cst_14 {dimension_numbers = #tpu.dot_dimension_numbers<[1], [0], [0], [1], [0, 0, 1, 1], [], []>} : vector<16x64xbf16>, vector<64x256xbf16>, vector<16x256xf32> -> vector<16x256xf32>
    %21 = vector.broadcast %3 : vector<16x1xf32> to vector<16x256xf32>
    %22 = arith.addf %20, %21 : vector<16x256xf32>
    %c0_15 = arith.constant 0 : index
    %c0_16 = arith.constant 0 : index
    %23 = vector.load %arg8[%c0_15, %c0_16] : memref<16x256xf32, #tpu.memory_space<vmem>>, vector<16x256xf32>
    tpu.vector_store %arg8[%c0_15, %c0_16], %22 {strides = array<i32>} : memref<16x256xf32, #tpu.memory_space<vmem>>, vector<16x256xf32>,
    %c0_17 = arith.constant 0 : index
    %c0_18 = arith.constant 0 : index
    %24 = vector.load %arg2[%c0_17, %c0_18] : memref<16x256xf32, #tpu.memory_space<vmem>>, vector<16x256xf32>
    %25 = arith.addf %22, %24 : vector<16x256xf32>
    %26 = tpu.iota {dimensions = array<i32: 0>} : vector<16x256xi32>
    %cst_19 = arith.constant dense<0xFF800000> : vector<256xf32>
    %27 = vector.multi_reduction <maximumf>, %25, %cst_19 [0] : vector<16x256xf32> to vector<256xf32>
    %28 = vector.shape_cast %27 : vector<256xf32> to vector<1x256xf32>
    %29 = vector.broadcast %28 : vector<1x256xf32> to vector<16x256xf32>
    %30 = arith.cmpf oge, %25, %29 : vector<16x256xf32>
    %c16_i32 = arith.constant 16 : i32
    %31 = vector.broadcast %c16_i32 : i32 to vector<16x256xi32>
    %32 = arith.select %30, %26, %31 : vector<16x256xi1>, vector<16x256xi32>
    %cst_20 = arith.constant dense<2147483647> : vector<256xi32>
    %33 = vector.multi_reduction <minsi>, %32, %cst_20 [0] : vector<16x256xi32> to vector<256xi32>
    %34 = vector.shape_cast %33 : vector<256xi32> to vector<1x256xi32>
    %35 = vector.broadcast %34 : vector<1x256xi32> to vector<16x256xi32>
    %36 = arith.cmpi eq, %26, %35 : vector<16x256xi32>
    %37 = arith.extui %36 : vector<16x256xi1> to vector<16x256xi32>
    %38 = arith.sitofp %37 : vector<16x256xi32> to vector<16x256xf32>
    %c0_21 = arith.constant 0 : index
    %c0_22 = arith.constant 0 : index
    %39 = vector.load %arg7[%c0_21, %c0_22] : memref<16x256xf32, #tpu.memory_space<vmem>>, vector<16x256xf32>
    tpu.vector_store %arg7[%c0_21, %c0_22], %38 {strides = array<i32>} : memref<16x256xf32, #tpu.memory_space<vmem>>, vector<16x256xf32>,
    return
  }
  func.func @transform_0(%arg0: i32) -> (i32, i32) {
    %c0_i32 = arith.constant 0 : i32
    %c0_i32_0 = arith.constant 0 : i32
    return %c0_i32, %arg0 : i32, i32
  }
  func.func @transform_1(%arg0: i32) -> (i32, i32) {
    %c0_i32 = arith.constant 0 : i32
    %c0_i32_0 = arith.constant 0 : i32
    return %c0_i32, %arg0 : i32, i32
  }
  func.func @transform_2(%arg0: i32) -> (i32, i32) {
    %c0_i32 = arith.constant 0 : i32
    %c0_i32_0 = arith.constant 0 : i32
    %c0_i32_1 = arith.constant 0 : i32
    return %c0_i32, %c0_i32_0 : i32, i32
  }
  func.func @transform_3(%arg0: i32) -> (i32, i32) {
    %c0_i32 = arith.constant 0 : i32
    %c0_i32_0 = arith.constant 0 : i32
    %c0_i32_1 = arith.constant 0 : i32
    return %c0_i32, %c0_i32_0 : i32, i32
  }
  func.func @transform_4(%arg0: i32) -> (i32, i32) {
    %c0_i32 = arith.constant 0 : i32
    %c0_i32_0 = arith.constant 0 : i32
    %c0_i32_1 = arith.constant 0 : i32
    return %c0_i32, %c0_i32_0 : i32, i32
  }
  func.func @transform_5(%arg0: i32) -> (i32, i32) {
    %c0_i32 = arith.constant 0 : i32
    %c0_i32_0 = arith.constant 0 : i32
    %c0_i32_1 = arith.constant 0 : i32
    return %c0_i32, %c0_i32_0 : i32, i32
  }
  func.func @transform_6(%arg0: i32) -> (i32, i32) {
    %c0_i32 = arith.constant 0 : i32
    %c0_i32_0 = arith.constant 0 : i32
    return %c0_i32, %arg0 : i32, i32
  }
  func.func @transform_7(%arg0: i32) -> (i32, i32) {
    %c0_i32 = arith.constant 0 : i32
    %c0_i32_0 = arith.constant 0 : i32
    return %c0_i32, %arg0 : i32, i32
  }
}

</mosaic_0001>

<bundles_post_ra>
// kernel: tpu_custom_call.1
= control target key start
LH: loop header
LB: loop body
LE: loop exit
PB: predicated region body
PF: predicated region fallthrough
CT: control target
= control target key end

     0   :  { %13 = vsyncpa [#allocation3], 0  ;;  %v667_v7 = vmov 0   ;;  %vm126_vm0 = vcmask 261120   ;;  %s862_s0 = inlined_call_operand.vmem [shape: f32[32,256], index: 0, kind: input, shape index: {}]   ;;  %s863_s1 = inlined_call_operand.vmem [shape: f32[16,256], index: 1, kind: input, shape index: {}]   ;;  %s864_s2 = inlined_call_operand.vmem [shape: bf16[64,32], index: 2, kind: input, shape index: {}]   ;;  %s865_s3 = inlined_call_operand.vmem [shape: bf16[64,64], index: 3, kind: input, shape index: {}]   ;;  %s866_s4 = inlined_call_operand.vmem [shape: bf16[16,64], index: 4, kind: input, shape index: {}]   ;;  %s867_s5 = inlined_call_operand.vmem [shape: f32[144,1], index: 5, kind: input, shape index: {}]   ;;  %s868_s6 = inlined_call_operand.hbm [shape: f32[16,256], index: 6, kind: output, shape index: {0}]   ;;  %s869_s7 = inlined_call_operand.hbm [shape: f32[16,256], index: 7, kind: output, shape index: {1}]  }
   0x1   :  { %v33_v0 = vld [vmem:[%s862_s0 + $0x28] sm:$0xff]  ;;  %v35_v1 = vld [vmem:[%s862_s0 + $0x38] sm:$0xff]  ;;  %v32_v2 = vld [vmem:[%s862_s0 + $0x20] sm:$0xff]  ;;  %171 = vmatprep.mubr.bf16.mxu0 %v667_v7  ;;  %612 = vset.pattern.permute.xlu0 %v667_v7 }
   0x2   :  { %v65_v3 = vpack.c.bf16 %v35_v1, %v33_v0  ;;  %v34_v4 = vld [vmem:[%s862_s0 + $0x30] sm:$0xff]  ;;  %v29_v5 = vld [vmem:[%s862_s0 + $0x8] sm:$0xff]  ;;  %v31_v6 = vld [vmem:[%s862_s0 + $0x18] sm:$0xff]  ;;  %613 = vset.pattern.permute.xlu1 %v667_v7  ;;  %349 = vmatprep.mubr.bf16.mxu1 %v667_v7 }
   0x3   :  { %v64_v8 = vpack.c.bf16 %v34_v4, %v32_v2  ;;  %v63_v9 = vpack.c.bf16 %v31_v6, %v29_v5  ;;  %v28_v10 = vld [vmem:[%s862_s0] sm:$0xff]  ;;  %v30_v11 = vld [vmem:[%s862_s0 + $0x10] sm:$0xff]  ;;  %v43_v16 = vld [vmem:[%s867_s5 + $0x38] sm:$0xff] }
   0x4   :  { %151 = vmatprep.subr.bf16.mxu0 %v65_v3  ;;  %v62_v12 = vpack.c.bf16 %v30_v11, %v28_v10  ;;  %v42_v13 = vld [vmem:[%s867_s5 + $0x30] sm:$0xff]  ;;  %v614_v14 = vld [vmem:[%s864_s2] sm:$0xff]   ;;  %v41_v17 = vld [vmem:[%s867_s5 + $0x28] sm:$0xff] }
   0x5   :  { %152 = vmatpush1.bf16.msra.mxu0 %v64_v8  ;;  %98 = vperm.xlu0 %612, %v42_v13   ;;  %v40_v15 = vld [vmem:[%s867_s5 + $0x20] sm:$0xff]  ;;  %v38_v18 = vld [vmem:[%s867_s5 + $0x10] sm:$0xff]  ;;  %v39_v19 = vld [vmem:[%s867_s5 + $0x18] sm:$0xff] }
   0x6   :  { %153 = vmatprep.subr.bf16.mxu0 %v63_v9  ;;  %88 = vperm.xlu1 %613, %v40_v15   ;;  %v615_v20 = vld [vmem:[%s864_s2 + $0x8] sm:$0xff]   ;;  %v36_v21 = vld [vmem:[%s867_s5] sm:$0xff] }
   0x9   :  { %154 = vmatpush1.bf16.msra.mxu0 %v62_v12  ;;  %103 = vperm.xlu0 %612, %v43_v16  }
   0xa   :  { %93 = vperm.xlu1 %613, %v41_v17  }
   0xc   :  { %588 = vmatmul.mubr.msk.bf16.vlgmr.msra.gmra.mxu0 %vm126_vm0, %v614_v14 }
   0xd   :  { %181 = vmatprep.mubr.bf16.mxu0 %v667_v7  ;;  %78 = vperm.xlu0 %612, %v38_v18  }
   0xe   :  { %83 = vperm.xlu1 %613, %v39_v19  }
   0xf   :  { %14 = vsyncpa [#allocation5], 0  ;;  %v37_v22 = vld [vmem:[%s867_s5 + $0x8] sm:$0xff]  ;;  %v50_v23 = vld [vmem:[%s867_s5 + $0x70] sm:$0xff]  ;;  %vm304_vm1 = vcmask 523264  }
  0x10   :  { %v51_v24 = vld [vmem:[%s867_s5 + $0x78] sm:$0xff]  ;;  %v616_v25 = vld [vmem:[%s864_s2 + $0x10] sm:$0xff]   ;;  %v48_v26 = vld [vmem:[%s867_s5 + $0x60] sm:$0xff] }
  0x11   :  { %68 = vperm.xlu0 %612, %v36_v21   ;;  %v49_v27 = vld [vmem:[%s867_s5 + $0x68] sm:$0xff]  ;;  %v46_v28 = vld [vmem:[%s867_s5 + $0x50] sm:$0xff]  ;;  %v47_v29 = vld [vmem:[%s867_s5 + $0x58] sm:$0xff] }
  0x12   :  { %73 = vperm.xlu1 %613, %v37_v22   ;;  %v617_v30 = vld [vmem:[%s864_s2 + $0x18] sm:$0xff]   ;;  %v44_v31 = vld [vmem:[%s867_s5 + $0x40] sm:$0xff]  ;;  %v45_v32 = vld [vmem:[%s867_s5 + $0x48] sm:$0xff] }
  0x13   :  { %v52_v33 = vld [vmem:[%s867_s5 + $0x80] sm:$0xff]  ;;  %v53_v34 = vld [vmem:[%s867_s5 + $0x88] sm:$0xff] }
  0x14   :  { %589 = vmatmul.mubr.msk.bf16.gmra.mxu0 %vm126_vm0, %v615_v20 }
  0x15   :  { %191 = vmatprep.mubr.bf16.mxu0 %v667_v7  ;;  %276 = vperm.xlu0 %612, %v50_v23  }
  0x16   :  { %281 = vperm.xlu1 %613, %v51_v24  }
  0x19   :  { %266 = vperm.xlu0 %612, %v48_v26  }
  0x1a   :  { %271 = vperm.xlu1 %613, %v49_v27  }
  0x1c   :  { %590 = vmatmul.mubr.msk.bf16.gmra.mxu0 %vm126_vm0, %v616_v25 }
  0x1d   :  { %201 = vmatprep.mubr.bf16.mxu0 %v667_v7  ;;  %256 = vperm.xlu0 %612, %v46_v28  }
  0x1e   :  { %261 = vperm.xlu1 %613, %v47_v29  }
  0x21   :  { %246 = vperm.xlu0 %612, %v44_v31  }
  0x22   :  { %251 = vperm.xlu1 %613, %v45_v32  }
  0x24   :  { %591 = vmatmul.mubr.msk.bf16.gmra.mxu0 %vm126_vm0, %v617_v30 }
  0x25   :  { %466 = vmatprep.mubr.bf16.mxu0 %v667_v7  ;;  %418 = vperm.xlu0 %612, %v52_v33  }
  0x26   :  { %423 = vperm.xlu1 %613, %v53_v34  }
  0x80   :  { %v99_v46 = vpop.permute.xlu0 %98 }
  0x81   :  { %v89_v44 = vpop.permute.xlu1 %88 }
  0x84   :  { %v104_v51 = vpop.permute.xlu0 %103 }
  0x85   :  { %v94_v49 = vpop.permute.xlu1 %93 }
  0x88   :  { %v79_v62 = vpop.permute.xlu0 %78 }
  0x89   :  { %v84_v57 = vpop.permute.xlu1 %83 }
  0x8c   :  { %v69_v18 = vpop.permute.xlu0 %68 }
  0x8d   :  { %v74_v11 = vpop.permute.xlu1 %73 }
  0xcc   :  { %v173_v35 = vpop.f32.mrf.mxu0 }
  0xcd   :  { %v174_v28 = vadd.f32 %v173_v35, %v69_v18  ;;  %v619_v35 = vld [vmem:[%s865_s3 + $0x8] sm:$0xff]  }
  0xce   :  { %v175_v36 = vpop.f32.mrf.mxu0 }
  0xcf   :  { %v176_v21 = vadd.f32 %v175_v36, %v69_v18  ;;  %v212_v34 = vmax.f32 %v174_v28, 0.0  ;;  %v618_v36 = vld [vmem:[%s865_s3] sm:$0xff]  }
  0xd0   :  { %v177_v37 = vpop.f32.mrf.mxu0 }
  0xd1   :  { %v178_v23 = vadd.f32 %v177_v37, %v74_v11  ;;  %v213_v30 = vmax.f32 %v176_v21, 0.0  ;;  %v620_v37 = vld [vmem:[%s865_s3 + $0x10] sm:$0xff]  }
  0xd2   :  { %v179_v38 = vpop.f32.mrf.mxu0 }
  0xd3   :  { %v180_v15 = vadd.f32 %v179_v38, %v74_v11  ;;  %v214_v31 = vmax.f32 %v178_v23, 0.0 }
  0xd4   :  { %v183_v39 = vpop.f32.mrf.mxu0 }
  0xd5   :  { %v184_v19 = vadd.f32 %v183_v39, %v79_v62  ;;  %v215_v26 = vmax.f32 %v180_v15, 0.0  ;;  %v236_v38 = vpack.c.bf16 %v214_v31, %v212_v34  ;;  %v621_v39 = vld [vmem:[%s865_s3 + $0x18] sm:$0xff]  }
  0xd6   :  { %v185_v40 = vpop.f32.mrf.mxu0 }
  0xd7   :  { %v186_v8 = vadd.f32 %v185_v40, %v79_v62  ;;  %v216_v29 = vmax.f32 %v184_v19, 0.0  ;;  %v237_v33 = vpack.c.bf16 %v215_v26, %v213_v30 }
  0xd8   :  { %v187_v41 = vpop.f32.mrf.mxu0 }
  0xd9   :  { %v188_v12 = vadd.f32 %v187_v41, %v84_v57  ;;  %v217_v22 = vmax.f32 %v186_v8, 0.0 }
  0xda   :  { %v189_v42 = vpop.f32.mrf.mxu0 }
  0xdb   :  { %v190_v1 = vadd.f32 %v189_v42, %v84_v57  ;;  %v218_v24 = vmax.f32 %v188_v12, 0.0 }
  0xdc   :  { %v193_v43 = vpop.f32.mrf.mxu0 }
  0xdd   :  { %v194_v5 = vadd.f32 %v193_v43, %v89_v44  ;;  %v219_v16 = vmax.f32 %v190_v1, 0.0  ;;  %v238_v32 = vpack.c.bf16 %v218_v24, %v216_v29 }
  0xde   :  { %v195_v45 = vpop.f32.mrf.mxu0 }
  0xdf   :  { %v196_v60 = vadd.f32 %v195_v45, %v89_v44  ;;  %v220_v20 = vmax.f32 %v194_v5, 0.0  ;;  %v239_v27 = vpack.c.bf16 %v219_v16, %v217_v22 }
  0xe0   :  { %v197_v47 = vpop.f32.mrf.mxu0 }
  0xe1   :  { %v198_v63 = vadd.f32 %v197_v47, %v94_v49  ;;  %v221_v9 = vmax.f32 %v196_v60, 0.0 }
  0xe2   :  { %v199_v48 = vpop.f32.mrf.mxu0 }
  0xe3   :  { %v200_v54 = vadd.f32 %v199_v48, %v94_v49  ;;  %v222_v13 = vmax.f32 %v198_v63, 0.0  ;;  %v282_v49 = vpop.permute.xlu1 %281 }
  0xe4   :  { %v203_v50 = vpop.f32.mrf.mxu0 }
  0xe5   :  { %v204_v58 = vadd.f32 %v203_v50, %v99_v46  ;;  %v223_v2 = vmax.f32 %v200_v54, 0.0  ;;  %v240_v25 = vpack.c.bf16 %v222_v13, %v220_v20 }
  0xe6   :  { %v205_v52 = vpop.f32.mrf.mxu0 }
  0xe7   :  { %v206_v55 = vadd.f32 %v205_v52, %v99_v46  ;;  %v224_v6 = vmax.f32 %v204_v58, 0.0  ;;  %v241_v17 = vpack.c.bf16 %v223_v2, %v221_v9 }
  0xe8   :  { %v207_v53 = vpop.f32.mrf.mxu0 }
  0xe9   :  { %v208_v56 = vadd.f32 %v207_v53, %v104_v51  ;;  %v225_v3 = vmax.f32 %v206_v55, 0.0  ;;  %v272_v53 = vpop.permute.xlu1 %271 }
  0xea   :  { %v209_v59 = vpop.f32.mrf.mxu0 }
  0xeb   :  { %v210_v61 = vadd.f32 %v209_v59, %v104_v51  ;;  %v226_v0 = vmax.f32 %v208_v56, 0.0  ;;  %v277_v51 = vpop.permute.xlu0 %276 }
  0xed   :  { %v227_v4 = vmax.f32 %v210_v61, 0.0  ;;  %v242_v14 = vpack.c.bf16 %v226_v0, %v224_v6  ;;  %v262_v61 = vpop.permute.xlu1 %261 }
  0xef   :  { %v243_v10 = vpack.c.bf16 %v227_v4, %v225_v3  ;;  %v267_v55 = vpop.permute.xlu0 %266 }
  0xf1   :  { %325 = vmatprep.subr.bf16.mxu1 %v243_v10  ;;  %v252_v15 = vpop.permute.xlu1 %251 }
  0xf2   :  { %326 = vmatpush1.bf16.msra.mxu1 %v242_v14 }
  0xf3   :  { %327 = vmatprep.subr.bf16.mxu1 %v241_v17  ;;  %v257_v2 = vpop.permute.xlu0 %256 }
  0xf6   :  { %328 = vmatpush1.bf16.msra.mxu1 %v240_v25 }
  0xf7   :  { %329 = vmatprep.subr.bf16.mxu1 %v239_v27  ;;  %v247_v22 = vpop.permute.xlu0 %246 }
  0xfa   :  { %330 = vmatpush1.bf16.msra.mxu1 %v238_v32 }
  0xfb   :  { %331 = vmatprep.subr.bf16.mxu1 %v237_v33 }
  0xfe   :  { %332 = vmatpush1.bf16.msra.mxu1 %v236_v38 }
 0x101   :  { %596 = vmatmul.mubr.msk.bf16.vlgmr.msra.gmra.mxu1 %vm304_vm1, %v618_v36 }
 0x102   :  { %359 = vmatprep.mubr.bf16.mxu1 %v667_v7 }
 0x109   :  { %597 = vmatmul.mubr.msk.bf16.gmra.mxu1 %vm304_vm1, %v619_v35 }
 0x10a   :  { %369 = vmatprep.mubr.bf16.mxu1 %v667_v7 }
 0x111   :  { %598 = vmatmul.mubr.msk.bf16.gmra.mxu1 %vm304_vm1, %v620_v37 }
 0x112   :  { %379 = vmatprep.mubr.bf16.mxu1 %v667_v7 }
 0x119   :  { %599 = vmatmul.mubr.msk.bf16.gmra.mxu1 %vm304_vm1, %v621_v39 }
 0x1c1   :  { %v351_v40 = vpop.f32.mrf.mxu1 }
 0x1c2   :  { %v352_v32 = vadd.f32 %v351_v40, %v247_v22 }
 0x1c3   :  { %v353_v41 = vpop.f32.mrf.mxu1 }
 0x1c4   :  { %v354_v25 = vadd.f32 %v353_v41, %v247_v22  ;;  %v390_v37 = vmax.f32 %v352_v32, 0.0  ;;  %v622_v41 = vld [vmem:[%s866_s4] sm:$0xff]   ;;  %s668_s4 = smov [#allocation4]  }
 0x1c5   :  { %v355_v42 = vpop.f32.mrf.mxu1  ;;  %s569_s23 = sshll.u32 %s668_s4, 4  ;;  %s570_s23 = int_to_ptr.vmem [resolvable:$true] %s569_s23 }
 0x1c6   :  { %v356_v27 = vadd.f32 %v355_v42, %v252_v15  ;;  %v391_v34 = vmax.f32 %v354_v25, 0.0  ;;  %v419_v42 = vpop.permute.xlu0 %418  ;;  %s623_s28 = scalar_lea.vmem %s570_s23, 512  ;;  %p628_p1 = scmp.lt.s32.totalorder %s570_s23, %s570_s23 }
 0x1c7   :  { %v357_v43 = vpop.f32.mrf.mxu1  ;;  %p624_p0 = scmp.ne.s32.totalorder %s570_s23, %s623_s28  ;;  %p629_p2 = scmp.lt.s32.totalorder %s623_s28, %s623_s28 }
 0x1c8   :  { %v358_v19 = vadd.f32 %v357_v43, %v252_v15  ;;  %v392_v38 = vmax.f32 %v356_v27, 0.0 }
 0x1c9   :  { %v361_v44 = vpop.f32.mrf.mxu1  ;;  %p630_p3 = por %p629_p2, %p628_p1 }
 0x1ca   :  { %v362_v23 = vadd.f32 %v361_v44, %v257_v2  ;;  %v393_v30 = vmax.f32 %v358_v19, 0.0  ;;  %v408_v39 = vpack.c.bf16 %v392_v38, %v390_v37 }
 0x1cb   :  { %v363_v45 = vpop.f32.mrf.mxu1  ;;  %p631_p4 = pnand %p630_p3, %p624_p0 }
 0x1cc   :  { %v364_v12 = vadd.f32 %v363_v45, %v257_v2  ;;  %v394_v33 = vmax.f32 %v362_v23, 0.0  ;;  %v409_v35 = vpack.c.bf16 %v393_v30, %v391_v34 }
 0x1cd   :  { %v365_v46 = vpop.f32.mrf.mxu1 }
 0x1ce   :  { %v366_v16 = vadd.f32 %v365_v46, %v262_v61  ;;  %v395_v26 = vmax.f32 %v364_v12, 0.0  ;;  %v424_v46 = vpop.permute.xlu1 %423 }
 0x1cf   :  { %v367_v47 = vpop.f32.mrf.mxu1 }
 0x1d0   :  { %v368_v5 = vadd.f32 %v367_v47, %v262_v61  ;;  %v396_v28 = vmax.f32 %v366_v16, 0.0  ;;  %v481_v47 = vld [vmem:[%s863_s1] sm:$0xff] }
 0x1d1   :  { %v371_v48 = vpop.f32.mrf.mxu1 }
 0x1d2   :  { %v372_v10 = vadd.f32 %v371_v48, %v267_v55  ;;  %v397_v20 = vmax.f32 %v368_v5, 0.0  ;;  %v410_v36 = vpack.c.bf16 %v396_v28, %v394_v33 }
 0x1d3   :  { %v373_v50 = vpop.f32.mrf.mxu1 }
 0x1d4   :  { %v374_v0 = vadd.f32 %v373_v50, %v267_v55  ;;  %v398_v24 = vmax.f32 %v372_v10, 0.0  ;;  %v411_v31 = vpack.c.bf16 %v397_v20, %v395_v26 }
 0x1d5   :  { %v375_v52 = vpop.f32.mrf.mxu1 }
 0x1d6   :  { %v376_v3 = vadd.f32 %v375_v52, %v272_v53  ;;  %v399_v13 = vmax.f32 %v374_v0, 0.0 }
 0x1d7   :  { %v377_v7 = vpop.f32.mrf.mxu1 }
 0x1d8   :  { %v378_v58 = vadd.f32 %v377_v7, %v272_v53  ;;  %v400_v17 = vmax.f32 %v376_v3, 0.0  ;;  %v484_v7 = vld [vmem:[%s863_s1 + $0x18] sm:$0xff] }
 0x1d9   :  { %v381_v54 = vpop.f32.mrf.mxu1 }
 0x1da   :  { %v382_v62 = vadd.f32 %v381_v54, %v277_v51  ;;  %v401_v6 = vmax.f32 %v378_v58, 0.0  ;;  %v412_v29 = vpack.c.bf16 %v400_v17, %v398_v24 }
 0x1db   :  { %v383_v56 = vpop.f32.mrf.mxu1 }
 0x1dc   :  { %v384_v59 = vadd.f32 %v383_v56, %v277_v51  ;;  %v402_v11 = vmax.f32 %v382_v62, 0.0  ;;  %v413_v21 = vpack.c.bf16 %v401_v6, %v399_v13  ;;  %v482_v51 = vld [vmem:[%s863_s1 + $0x8] sm:$0xff] }
 0x1dd   :  { %v385_v57 = vpop.f32.mrf.mxu1 }
 0x1de   :  { %v386_v60 = vadd.f32 %v385_v57, %v282_v49  ;;  %v403_v8 = vmax.f32 %v384_v59, 0.0 }
 0x1df   :  { %v387_v63 = vpop.f32.mrf.mxu1 }
 0x1e0   :  { %v388_v1 = vadd.f32 %v387_v63, %v282_v49  ;;  %v404_v4 = vmax.f32 %v386_v60, 0.0  ;;  %v483_v49 = vld [vmem:[%s863_s1 + $0x10] sm:$0xff] }
 0x1e2   :  { %v405_v9 = vmax.f32 %v388_v1, 0.0  ;;  %v414_v18 = vpack.c.bf16 %v404_v4, %v402_v11 }
 0x1e4   :  { %v415_v14 = vpack.c.bf16 %v405_v9, %v403_v8 }
 0x1e6   :  { %442 = vmatprep.subr.bf16.mxu0 %v415_v14 }
 0x1e7   :  { %443 = vmatpush1.bf16.msra.mxu0 %v414_v18 }
 0x1e8   :  { %444 = vmatprep.subr.bf16.mxu0 %v413_v21 }
 0x1eb   :  { %445 = vmatpush1.bf16.msra.mxu0 %v412_v29 }
 0x1ec   :  { %446 = vmatprep.subr.bf16.mxu0 %v411_v31 }
 0x1ef   :  { %447 = vmatpush1.bf16.msra.mxu0 %v410_v36 }
 0x1f0   :  { %448 = vmatprep.subr.bf16.mxu0 %v409_v35 }
 0x1f3   :  { %449 = vmatpush1.bf16.msra.mxu0 %v408_v39 }
 0x1f6   :  { %601 = vmatmul.mubr.msk.bf16.vlgmr.msra.gmra.mxu0 %vm304_vm1, %v622_v41 }
 0x2b6   :  { %v468_v40 = vpop.f32.mrf.mxu0 }
 0x2b7   :  { %v469_v43 = vadd.f32 %v468_v40, %v419_v42 }
 0x2b8   :  { %v470_v44 = vpop.f32.mrf.mxu0 }
 0x2b9   :  { %477 = vst [vmem:[#allocation4] sm:$0xff] %v469_v43  ;;  %v471_v45 = vadd.f32 %v470_v44, %v419_v42  ;;  %v485_v53 = vadd.f32 %v481_v47, %v469_v43 }
 0x2ba   :  { %v472_v48 = vpop.f32.mrf.mxu0 }
 0x2bb   :  { %478 = vst [vmem:[#allocation4 + $0x8] sm:$0xff] %v471_v45  ;;  %v473_v50 = vadd.f32 %v472_v48, %v424_v46  ;;  %v486_v56 = vadd.f32 %v482_v51, %v471_v45 }
 0x2bc   :  { %v474_v52 = vpop.f32.mrf.mxu0 }
 0x2bd   :  { %479 = vst [vmem:[#allocation4 + $0x10] sm:$0xff] %v473_v50  ;;  %v487_v54 = vadd.f32 %v483_v49, %v473_v50  ;;  %v475_v55 = vadd.f32 %v474_v52, %v424_v46 }
 0x2bf   :  { %v492_v57 = vmax.f32 %v485_v53, %v487_v54  ;;  %480 = vst [vmem:[#allocation4 + $0x18] sm:$0xff] %v475_v55  ;;  %v488_v58 = vadd.f32 %v484_v7, %v475_v55 }
 0x2c0   :  { %634 = shalt.err (!%p631_p4)
}
 0x2c1   :  { %s669_s29 = smov 256   ;;  %s670_s30 = smov 16   ;;  %v493_v59 = vrot.slane %v492_v57, 4  ;;  %v499_v60 = vmax.f32 %v486_v56, %v488_v58  ;;  %v489_v61 = vlaneseq  ;;  %v672_v30 = vmov 0.0  }
 0x2c2   :  { %575 = dma.vmem_to_hbm [thread:$0]  %s570_s23, 512, %s869_s7, [#allocation5], %s669_s29, %s669_s29, %s670_s30  }
 0x2c3   :  { %v494_v62 = vmax.f32 %v492_v57, %v493_v59  ;;  %v500_v63 = vrot.slane %v499_v60, 4  ;;  %v490_v2 = vshrl.u32 %v489_v61, 7  ;;  %s671_s7 = smov [#allocation2]  }
 0x2c4   :  { %s557_s9 = sshll.u32 %s671_s7, 4  ;;  %s558_s9 = int_to_ptr.vmem [resolvable:$true] %s557_s9 }
 0x2c5   :  { %v495_v0 = vrot.slane %v494_v62, 2  ;;  %v501_v1 = vmax.f32 %v499_v60, %v500_v63  ;;  %v491_v8 = vadd.s32 8, %v490_v2  ;;  %s643_s10 = scalar_lea.vmem %s558_s9, 512  ;;  %p648_p6 = scmp.lt.s32.totalorder %s558_s9, %s558_s9 }
 0x2c6   :  { %p644_p5 = scmp.ne.s32.totalorder %s558_s9, %s643_s10  ;;  %p649_p7 = scmp.lt.s32.totalorder %s643_s10, %s643_s10 }
 0x2c7   :  { %v496_v3 = vmax.f32 %v494_v62, %v495_v0  ;;  %v502_v4 = vrot.slane %v501_v1, 2 }
 0x2c8   :  { %p650_p8 = por %p649_p7, %p648_p6 }
 0x2c9   :  { %v497_v5 = vrot.slane %v496_v3, 1  ;;  %v503_v6 = vmax.f32 %v501_v1, %v502_v4 }
 0x2ca   :  { %p651_p9 = pnand %p650_p8, %p644_p5 }
 0x2cb   :  { %v498_v9 = vmax.f32 %v496_v3, %v497_v5  ;;  %v504_v10 = vrot.slane %v503_v6, 1 }
 0x2cd   :  { %vm506_vm2 = vcmp.ge.f32.partialorder %v485_v53, %v498_v9  ;;  %vm508_vm3 = vcmp.ge.f32.partialorder %v487_v54, %v498_v9  ;;  %v505_v11 = vmax.f32 %v503_v6, %v504_v10 }
 0x2ce   :  { %v510_v12 = vsel %vm506_vm2, %v490_v2, 16  ;;  %v512_v13 = vsel %vm508_vm3, %v491_v8, 16 }
 0x2cf   :  { %vm514_vm4 = vcmp.lt.s32.totalorder %v510_v12, %v512_v13  ;;  %vm507_vm5 = vcmp.ge.f32.partialorder %v486_v56, %v505_v11  ;;  %vm509_vm6 = vcmp.ge.f32.partialorder %v488_v58, %v505_v11 }
 0x2d0   :  { %v515_v14 = vsel %vm514_vm4, %v510_v12, %v512_v13  ;;  %v511_v15 = vsel %vm507_vm5, %v490_v2, 16  ;;  %v513_v16 = vsel %vm509_vm6, %v491_v8, 16 }
 0x2d1   :  { %v516_v17 = vrot.slane %v515_v14, 4  ;;  %vm525_vm7 = vcmp.lt.s32.totalorder %v511_v15, %v513_v16 }
 0x2d2   :  { %v526_v18 = vsel %vm525_vm7, %v511_v15, %v513_v16 }
 0x2d3   :  { %vm517_vm8 = vcmp.lt.s32.totalorder %v515_v14, %v516_v17  ;;  %v527_v19 = vrot.slane %v526_v18, 4 }
 0x2d4   :  { %v518_v20 = vsel %vm517_vm8, %v515_v14, %v516_v17 }
 0x2d5   :  { %v519_v21 = vrot.slane %v518_v20, 2  ;;  %vm528_vm9 = vcmp.lt.s32.totalorder %v526_v18, %v527_v19 }
 0x2d6   :  { %v529_v22 = vsel %vm528_vm9, %v526_v18, %v527_v19 }
 0x2d7   :  { %vm520_vm10 = vcmp.lt.s32.totalorder %v518_v20, %v519_v21  ;;  %v530_v23 = vrot.slane %v529_v22, 2 }
 0x2d8   :  { %v521_v24 = vsel %vm520_vm10, %v518_v20, %v519_v21 }
 0x2d9   :  { %v522_v25 = vrot.slane %v521_v24, 1  ;;  %vm531_vm11 = vcmp.lt.s32.totalorder %v529_v22, %v530_v23 }
 0x2da   :  { %v532_v26 = vsel %vm531_vm11, %v529_v22, %v530_v23 }
 0x2db   :  { %vm523_vm12 = vcmp.lt.s32.totalorder %v521_v24, %v522_v25  ;;  %v533_v27 = vrot.slane %v532_v26, 1 }
 0x2dc   :  { %v524_v28 = vsel %vm523_vm12, %v521_v24, %v522_v25 }
 0x2dd   :  { %vm534_vm13 = vcmp.lt.s32.totalorder %v532_v26, %v533_v27  ;;  %vm536_vm14 = vcmp.eq.s32.totalorder %v490_v2, %v524_v28  ;;  %vm538_vm15 = vcmp.eq.s32.totalorder %v491_v8, %v524_v28 }
 0x2de   :  { %v535_v29 = vsel %vm534_vm13, %v532_v26, %v533_v27  ;;  %v602_v31 = vsel %vm536_vm14, 1.0, %v672_v30  ;;  %v604_v32 = vsel %vm538_vm15, 1.0, %v672_v30 }
 0x2df   :  { %vm537_vm0 = vcmp.eq.s32.totalorder %v490_v2, %v535_v29  ;;  %vm539_vm1 = vcmp.eq.s32.totalorder %v491_v8, %v535_v29  ;;  %548 = vst [vmem:[#allocation2] sm:$0xff] %v602_v31  ;;  %550 = vst [vmem:[#allocation2 + $0x10] sm:$0xff] %v604_v32 }
 0x2e0   :  { %v603_v33 = vsel %vm537_vm0, 1.0, %v672_v30  ;;  %v605_v34 = vsel %vm539_vm1, 1.0, %v672_v30 }
 0x2e1   :  { %549 = vst [vmem:[#allocation2 + $0x8] sm:$0xff] %v603_v33  ;;  %551 = vst [vmem:[#allocation2 + $0x18] sm:$0xff] %v605_v34 }
 0x2e2   :  { %654 = shalt.err (!%p651_p9)
}
 0x2e3   :  { %563 = dma.vmem_to_hbm [thread:$0]  %s558_s9, 512, %s868_s6, [#allocation3], %s669_s29, %s669_s29, %s670_s30  }
 0x2e4   :  { %663 = dma.done.wait [#allocation3], 512  }
 0x2e5   :  { %664 = vsyncadd [#allocation3], 4294966784 }
 0x2e6   :  { %665 = dma.done.wait [#allocation5], 512  }
 0x2e7   :  { %666 = vsyncadd [#allocation5], 4294966784 }
 0x2e8   :  { %582 = vsyncpa [#allocation3], 1 }
 0x2e9   :  { %583 = vsyncpa [#allocation5], 1 }

</bundles_post_ra>
